<compile_context>
chip_gen: v5e
topology: v5e:2x2
jax: 0.10.0
libtpu: 0.0.40
codegen_flags: <defaults>
</compile_context>

<pallas_src>
import jax
import jax.numpy as jnp
from jax.experimental import pallas as pl
from jax.experimental.pallas import tpu as pltpu

_LANES = 128
_SUBLANES = 8
_BLOCK_BYTES = 4 * 1024 * 1024  # ~4 MiB/block -> ~90%+ of HBM roofline


def _mish_kernel(x_ref, o_ref):
    x = x_ref[...]
    # f32 compute even for bf16 inputs (v5e VPU/EUP have no bf16 path)
    xf = x.astype(jnp.float32)

    # tanh(softplus(x)) = (t^2 + 2t) / (t^2 + 2t + 2),  t = e^x
    # No clamp on the exponent: for x > ~44 the rational form overflows to
    # inf/NaN, but that branch is masked by the select below, which matches
    # torch.nn.functional.softplus(threshold=20): mish(x) == x there in f32.
    t = jnp.exp(xf)                              # EUP
    num = t * (t + 2.0)                          # VPU
    den = num + 2.0
    inv = pl.reciprocal(den, approx=False)       # exact; refinement off the hot VALU path
    y = xf * num * inv
    y = jnp.where(xf > 20.0, xf, y)              # softplus threshold / overflow mask
    o_ref[...] = y.astype(o_ref.dtype)


def _mish_jnp(x):
    """Reference / tiny-tail path matching torch: x * tanh(softplus(x)), threshold=20."""
    xf = x.astype(jnp.float32)
    sp = jnp.where(xf > 20.0, xf, jnp.log1p(jnp.exp(jnp.minimum(xf, 20.0))))
    return (xf * jnp.tanh(sp)).astype(x.dtype)


def _mish_2d(x2d):
    """Run the Pallas kernel on a (rows, 128) slab."""
    rows = x2d.shape[0]
    itemsize = jnp.dtype(x2d.dtype).itemsize
    total_bytes = rows * _LANES * itemsize

    # dtype-aware block size: ~4 MiB per block, rows a multiple of 8
    budget_rows = max(
        _SUBLANES, (_BLOCK_BYTES // (_LANES * itemsize)) // _SUBLANES * _SUBLANES
    )
    block_rows = min(rows, budget_rows)  # == rows (full dim) or a multiple of 8
    steps = pl.cdiv(rows, block_rows)

    # v7x megacore: for arrays where per-step overhead is already noise
    # (>= 4 MiB), guarantee >= 4 balanced steps so each TensorCore streams
    # >= 2 blocks.  Size gate keeps this a no-op for small inputs on v5e/v6e.
    if steps < 4 and total_bytes >= 4 * 1024 * 1024 and rows >= 4 * _SUBLANES:
        block_rows = max(
            _SUBLANES,
            ((pl.cdiv(rows, 4) + _SUBLANES - 1) // _SUBLANES) * _SUBLANES,
        )
        steps = pl.cdiv(rows, block_rows)

    n = x2d.size
    cost = pl.CostEstimate(
        flops=11 * n,
        transcendentals=2 * n,            # exp + reciprocal per element
        bytes_accessed=2 * total_bytes,   # read + write
    )

    return pl.pallas_call(
        _mish_kernel,
        out_shape=jax.ShapeDtypeStruct(x2d.shape, x2d.dtype),
        grid_spec=pltpu.PrefetchScalarGridSpec(
            num_scalar_prefetch=0,
            grid=(steps,),
            # TODO(synk): if a profile shows exposed DMA, try pipeline_mode=pl.Buffered(3)
            in_specs=[pl.BlockSpec((block_rows, _LANES), lambda i: (i, 0))],
            out_specs=pl.BlockSpec((block_rows, _LANES), lambda i: (i, 0)),
        ),
        compiler_params=pltpu.CompilerParams(
            dimension_semantics=("parallel",),
            # 4 MiB blocks, in+out double-buffered ~= 16 MiB: well under the
            # 32 MiB cap and safe on v7x's 64 MiB physical VMEM.
            vmem_limit_bytes=32 * 1024 * 1024,
        ),
        cost_estimate=cost,
    )(x2d)


def mish(x):
    """Elementwise mish on an arbitrarily-shaped array via a Pallas TPU kernel."""
    orig_shape = x.shape
    n = x.size
    if n == 0:
        return x

    x_flat = x.reshape(-1)
    body_n = (n // _LANES) * _LANES
    tail_n = n - body_n

    if body_n == 0:
        # fewer than 128 elements: not worth a kernel launch
        return _mish_jnp(x_flat).reshape(orig_shape)

    body = _mish_2d(x_flat[:body_n].reshape(body_n // _LANES, _LANES)).reshape(-1)
    if tail_n == 0:
        return body.reshape(orig_shape)
    # ragged <128-element tail via jnp (avoids a full-array pad copy)
    tail = _mish_jnp(x_flat[body_n:])
    return jnp.concatenate([body, tail]).reshape(orig_shape)


if __name__ == "__main__":
    key = jax.random.PRNGKey(0)

    # NCHW input, matching the PyTorch ResNet activation usage
    x = jax.random.normal(key, (2, 4, 16, 16), dtype=jnp.float32)
    y = mish(x)
    jax.block_until_ready(y)
    assert y.shape == x.shape and y.dtype == x.dtype
    assert jnp.allclose(y, _mish_jnp(x), atol=1e-5, rtol=1e-4)

    # odd-sized input: exercises the 128-aligned body + <128-element tail path
    x2 = jax.random.normal(jax.random.PRNGKey(1), (3, 5, 7, 9), dtype=jnp.float32)
    y2 = mish(x2)
    jax.block_until_ready(y2)
    assert y2.shape == x2.shape and y2.dtype == x2.dtype
    assert jnp.allclose(y2, _mish_jnp(x2), atol=1e-5, rtol=1e-4)

    # extreme values: confirm the x>20 select masks the overflow (inf/NaN) branch
    vals = jnp.array([-1e4, -50.0, -20.0, -1.0, 0.0, 1.0, 20.0, 44.0, 50.0, 1e4],
                     dtype=jnp.float32)
    x3 = jnp.tile(vals, 26)  # 260 elements -> kernel body (256) + tail (4)
    y3 = mish(x3)
    jax.block_until_ready(y3)
    assert bool(jnp.isfinite(y3).all())
    assert jnp.allclose(y3, _mish_jnp(x3), atol=1e-5, rtol=1e-4)

    # bf16 path: block budget is dtype-aware, compute stays f32
    xb = jax.random.normal(jax.random.PRNGKey(2), (2, 4, 16, 16), dtype=jnp.bfloat16)
    yb = mish(xb)
    jax.block_until_ready(yb)
    assert yb.shape == xb.shape and yb.dtype == xb.dtype
    assert jnp.allclose(yb.astype(jnp.float32), _mish_jnp(xb).astype(jnp.float32),
                        atol=2e-2, rtol=2e-2)

    print("KERNEL_OK")
</pallas_src>

<mosaic_0001>
module attributes {stable_mosaic.version = 11 : i64} {
  func.func @_mish_kernel(%arg0: i32, %arg1: memref<16x128xf32, #tpu.memory_space<vmem>>, %arg2: memref<16x128xf32, #tpu.memory_space<vmem>>) attributes {dimension_semantics = [#tpu.dimension_semantics<parallel>], iteration_bounds = array<i64: 1>, scalar_prefetch = 0 : i64, scratch_operands = 0 : i64, tpu.core_type = #tpu.core_type<tc>, window_params = [{transform_indices = @transform_0, window_bounds = array<i64: 16, 128>}, {transform_indices = @transform_1, window_bounds = array<i64: 16, 128>}]} {
    %c0 = arith.constant 0 : index
    %c0_0 = arith.constant 0 : index
    %0 = vector.load %arg1[%c0, %c0_0] : memref<16x128xf32, #tpu.memory_space<vmem>>, vector<16x128xf32>
    %1 = math.exp %0 : vector<16x128xf32>
    %cst = arith.constant 2.000000e+00 : f32
    %2 = vector.broadcast %cst : f32 to vector<16x128xf32>
    %3 = arith.addf %1, %2 : vector<16x128xf32>
    %4 = arith.mulf %1, %3 : vector<16x128xf32>
    %cst_1 = arith.constant 2.000000e+00 : f32
    %5 = vector.broadcast %cst_1 : f32 to vector<16x128xf32>
    %6 = arith.addf %4, %5 : vector<16x128xf32>
    %7 = tpu.reciprocal %6 : vector<16x128xf32> -> vector<16x128xf32>
    %8 = arith.mulf %0, %4 : vector<16x128xf32>
    %9 = arith.mulf %8, %7 : vector<16x128xf32>
    %cst_2 = arith.constant 2.000000e+01 : f32
    %10 = vector.broadcast %cst_2 : f32 to vector<16x128xf32>
    %11 = arith.cmpf ogt, %0, %10 : vector<16x128xf32>
    %12 = arith.select %11, %0, %9 : vector<16x128xi1>, vector<16x128xf32>
    %c0_3 = arith.constant 0 : index
    %c0_4 = arith.constant 0 : index
    %13 = vector.load %arg2[%c0_3, %c0_4] : memref<16x128xf32, #tpu.memory_space<vmem>>, vector<16x128xf32>
    tpu.vector_store %arg2[%c0_3, %c0_4], %12 {strides = array<i32>} : memref<16x128xf32, #tpu.memory_space<vmem>>, vector<16x128xf32>,
    return
  }
  func.func @transform_0(%arg0: i32) -> (i32, i32) {
    %c0_i32 = arith.constant 0 : i32
    %c0_i32_0 = arith.constant 0 : i32
    return %arg0, %c0_i32 : i32, i32
  }
  func.func @transform_1(%arg0: i32) -> (i32, i32) {
    %c0_i32 = arith.constant 0 : i32
    %c0_i32_0 = arith.constant 0 : i32
    return %arg0, %c0_i32 : i32, i32
  }
}

</mosaic_0001>

<bundles_post_ra>
// kernel: tpu_custom_call.1
= control target key start
LH: loop header
LB: loop body
LE: loop exit
PB: predicated region body
PF: predicated region fallthrough
CT: control target
= control target key end

     0   :  { %6 = vsyncpa [#allocation3], 0  ;;  %s184_s0 = inlined_call_operand.hbm [shape: f32[16,128], index: 0, kind: input, shape index: {}]   ;;  %s185_s1 = inlined_call_operand.hbm [shape: f32[16,128], index: 1, kind: output, shape index: {}]  }
   0x1   :  { %7 = vsyncpa [#allocation4], 0  ;;  %s12_s8 = sshll.u32 %s184_s0, 4  ;;  %s158_s9 = smov [#allocation2]   ;;  %s13_s8 = int_to_ptr.hbm [resolvable:$true] %s12_s8 }
   0x2   :  { %s14_s10 = sshll.u32 %s158_s9, 4  ;;  %s159_s11 = smov 128   ;;  %s15_s10 = int_to_ptr.vmem [resolvable:$true] %s14_s10 }
   0x3   :  { %s160_s12 = smov 8  }
   0x4   :  { %20 = dma.hbm_to_vmem [thread:$0]  %s13_s8, 256, %s15_s10, [#allocation3], %s159_s11, %s159_s11, %s160_s12  }
   0x5   :  { %154 = dma.done.wait [#allocation3], 256  }
   0x6   :  { %155 = vsyncadd [#allocation3], 4294967040  ;;  %v25_v0 = vld [vmem:[#allocation2] sm:$0xff]  ;;  %v26_v1 = vld [vmem:[#allocation2 + $0x8] sm:$0xff]  ;;  %s161_s0 = smov [#allocation5]   ;;  %s81_s16 = sshll.u32 %s185_s1, 4  ;;  %s82_s16 = int_to_ptr.hbm [resolvable:$true] %s81_s16 }
   0x7   :  { %v27_v2 = vmul.f32 1.442695, %v25_v0  ;;  %v29_v3 = vmul.f32 1.442695, %v26_v1  ;;  %vm69_vm8 = vcmp.gt.f32.partialorder %v25_v0, 20.0  ;;  %s79_s13 = sshll.u32 %s161_s0, 4  ;;  %s80_s13 = int_to_ptr.vmem [resolvable:$true] %s79_s13 }
   0x8   :  { %vm70_vm9 = vcmp.gt.f32.partialorder %v26_v1, 20.0 }
   0x9   :  { %98 = vpow2.f32 %v27_v2 }
   0xa   :  { %100 = vpow2.f32 %v29_v3 }
   0xf   :  { %v99_v4 = vpop.eup %98 }
  0x10   :  { %v101_v5 = vpop.eup %100  ;;  %v31_v6 = vadd.f32 2.0, %v99_v4 }
  0x11   :  { %v32_v7 = vadd.f32 2.0, %v101_v5 }
  0x12   :  { %v33_v8 = vmul.f32 %v99_v4, %v31_v6 }
  0x13   :  { %v34_v9 = vmul.f32 %v101_v5, %v32_v7 }
  0x14   :  { %v35_v10 = vadd.f32 2.0, %v33_v8  ;;  %v65_v26 = vmul.f32 %v33_v8, %v25_v0 }
  0x15   :  { %v36_v11 = vadd.f32 2.0, %v34_v9  ;;  %v66_v29 = vmul.f32 %v34_v9, %v26_v1 }
  0x16   :  { %102 = vrcp.f32 %v35_v10  ;;  %vm42_vm0 = vweird.f32 %v35_v10  ;;  %v48_v15 = vand.u32 2147483648, %v35_v10  ;;  %v46_v18 = vand.u32 2147483647, %v35_v10 }
  0x17   :  { %104 = vrcp.f32 %v36_v11  ;;  %v62_v19 = vand.u32 2147483648, %v36_v11  ;;  %vm56_vm2 = vweird.f32 %v36_v11  ;;  %v60_v21 = vand.u32 2147483647, %v36_v11 }
  0x18   :  { %v49_v23 = vor.u32 1.1754944e-38, %v48_v15  ;;  %vm47_vm5 = vcmp.eq.f32.partialorder %v46_v18, 8.507059e+37 }
  0x19   :  { %v63_v27 = vor.u32 1.1754944e-38, %v62_v19  ;;  %vm61_vm7 = vcmp.eq.f32.partialorder %v60_v21, 8.507059e+37 }
  0x1c   :  { %v103_v12 = vpop.eup %102 }
  0x1d   :  { %v105_v13 = vpop.eup %104  ;;  %v38_v14 = vmul.f32 %v103_v12, %v35_v10  ;;  %vm43_vm1 = vweird.f32 %v103_v12 }
  0x1e   :  { %v52_v16 = vmul.f32 %v105_v13, %v36_v11  ;;  %vm57_vm3 = vweird.f32 %v105_v13  ;;  %vm44_vm4 = vmor %vm42_vm0, %vm43_vm1 }
  0x1f   :  { %v39_v17 = vsub.f32 1.0, %v38_v14  ;;  %vm58_vm6 = vmor %vm56_vm2, %vm57_vm3 }
  0x20   :  { %v53_v20 = vsub.f32 1.0, %v52_v16 }
  0x21   :  { %v40_v22 = vmul.f32 %v103_v12, %v39_v17 }
  0x22   :  { %v54_v24 = vmul.f32 %v105_v13, %v53_v20 }
  0x23   :  { %v41_v25 = vadd.f32 %v103_v12, %v40_v22 }
  0x24   :  { %v55_v28 = vadd.f32 %v105_v13, %v54_v24 }
  0x25   :  { %v45_v30 = vsel %vm44_vm4, %v103_v12, %v41_v25 }
  0x26   :  { %v50_v31 = vsel %vm47_vm5, %v49_v23, %v45_v30  ;;  %v59_v32 = vsel %vm58_vm6, %v105_v13, %v55_v28 }
  0x27   :  { %v67_v33 = vmul.f32 %v65_v26, %v50_v31  ;;  %v64_v34 = vsel %vm61_vm7, %v63_v27, %v59_v32 }
  0x28   :  { %v68_v35 = vmul.f32 %v66_v29, %v64_v34 }
  0x29   :  { %v71_v36 = vsel %vm69_vm8, %v25_v0, %v67_v33 }
  0x2a   :  { %73 = vst [vmem:[#allocation5] sm:$0xff] %v71_v36  ;;  %v72_v37 = vsel %vm70_vm9, %v26_v1, %v68_v35 }
  0x2b   :  { %74 = vst [vmem:[#allocation5 + $0x8] sm:$0xff] %v72_v37 }
  0x2c   :  { %87 = dma.vmem_to_hbm [thread:$0]  %s80_s13, 256, %s82_s16, [#allocation4], %s159_s11, %s159_s11, %s160_s12  }
  0x2d   :  { %156 = dma.done.wait [#allocation4], 256  }
  0x2e   :  { %157 = vsyncadd [#allocation4], 4294967040 }
  0x2f   :  { %92 = vsyncpa [#allocation3], 1 }
  0x30   :  { %93 = vsyncpa [#allocation4], 1 }

</bundles_post_ra>
